<compile_context>
chip_gen: v5e
topology: v5e:2x2
jax: 0.10.0
libtpu: 0.0.40
codegen_flags: <defaults>
</compile_context>

<pallas_src>
import functools

import jax
import jax.numpy as jnp
from jax import lax
from jax.experimental import pallas as pl
from jax.experimental.pallas import tpu as pltpu

NEG_SLOPE = 0.01       # F.leaky_relu default negative slope
PAD = 128              # lane-dense padded feature width for every layer
MAX_TILE_B = 512       # largest batch tile per grid step
NUM_LAYERS = 4         # hidden, hidden2, hidden3, qvalue
OUT_ROWS = 8           # sublane-aligned row count of the packed q output


def _leaky_relu(x):
    return jnp.where(x > 0, x, NEG_SLOPE * x)


def _choose_tiling(batch):
    """Pick (tile_b, padded_batch).

    Tiles are multiples of 8 (sublane aligned) and capped at MAX_TILE_B.
    Whenever the batch is large enough we keep >= 2 grid steps so the
    'parallel' batch axis can shard across v7x's two TensorCores; multi-tile
    tiles are multiples of 128 so the packed q output block stays lane aligned.
    """
    if batch <= 128:
        tile = max(8, -(-batch // 8) * 8)
        return tile, tile
    half = -(-batch // 2)
    tile = max(128, min(MAX_TILE_B, (half // 128) * 128))
    b_pad = -(-batch // tile) * tile
    return tile, b_pad


def _mlp_kernel(x_ref, w_ref, b_ref, bq_ref, o_ref, *, num_in_pad):
    # x_ref : (TILE_B, num_in_pad) f32 input tile
    # w_ref : (4, PAD, PAD) f32 zero-padded weight slab; layers 0-2 stored
    #         [in, out], layer 3 (qvalue) stored TRANSPOSED [out, in] (row 0).
    # b_ref : (3, 1, PAD) f32 zero-padded hidden-layer bias slab
    # bq_ref: (1,) f32 qvalue bias (SMEM scalar)
    # o_ref : (OUT_ROWS, TILE_B) f32; row 0 holds the q values lane-dense.
    h = jnp.dot(x_ref[...], w_ref[0, 0:num_in_pad, :],
                preferred_element_type=jnp.float32) + b_ref[0]
    h = _leaky_relu(h)

    h = jnp.dot(h, w_ref[1], preferred_element_type=jnp.float32) + b_ref[1]
    h = _leaky_relu(h)

    h = jnp.dot(h, w_ref[2], preferred_element_type=jnp.float32) + b_ref[2]
    h = _leaky_relu(h)

    # Final layer as A @ B^T so the q values land lane-dense along the batch
    # axis (full-lane stores, no 128-wide padded output slab).
    wq_t = w_ref[3, 0:OUT_ROWS, :]                       # (8, PAD), row 0 real
    q_rows = lax.dot_general(
        wq_t, h, dimension_numbers=(((1,), (1,)), ((), ())),
        preferred_element_type=jnp.float32)              # (8, TILE_B)
    o_ref[...] = q_rows + bq_ref[0]


def net_forward_batched(x, w_packed, b_hidden, bq):
    """Batched Q-value forward. x: (B, num_input) f32 -> (B, 1) f32."""
    x = jnp.asarray(x, jnp.float32)
    B, num_in = x.shape
    assert num_in <= PAD, "num_input must fit the 128-wide packed slab"
    num_in_pad = max(8, -(-num_in // 8) * 8)             # sublane-align K
    tile_b, b_pad = _choose_tiling(B)
    if num_in_pad != num_in or b_pad != B:
        x = jnp.pad(x, ((0, b_pad - B), (0, num_in_pad - num_in)))
    num_tiles = b_pad // tile_b

    out = pl.pallas_call(
        functools.partial(_mlp_kernel, num_in_pad=num_in_pad),
        out_shape=jax.ShapeDtypeStruct((OUT_ROWS, b_pad), jnp.float32),
        grid=(num_tiles,),
        in_specs=[
            # batch tile of inputs
            pl.BlockSpec((tile_b, num_in_pad), lambda i: (i, 0)),
            # packed weights / hidden biases: constant block index -> stay
            # resident in VMEM across all grid steps (one DMA per call)
            pl.BlockSpec((NUM_LAYERS, PAD, PAD), lambda i: (0, 0, 0)),
            pl.BlockSpec((NUM_LAYERS - 1, 1, PAD), lambda i: (0, 0, 0)),
            # qvalue bias: single f32 scalar in SMEM
            pl.BlockSpec(memory_space=pltpu.MemorySpace.SMEM),
        ],
        out_specs=pl.BlockSpec((OUT_ROWS, tile_b), lambda i: (0, i)),
        compiler_params=pltpu.CompilerParams(
            dimension_semantics=("parallel",)),
    )(x, w_packed, b_hidden, bq)

    # Row 0 of the packed output holds the q values (lane-dense along batch).
    return out[0, :B][:, None]


def net_forward(s, a, w_packed, b_hidden, bq):
    """Pallas equivalent of NET.forward(s, a): single sample -> (1, 1)."""
    # torch did: x = torch.tensor(np.append(s, a)).unsqueeze(0)
    x = jnp.concatenate([jnp.ravel(s), jnp.ravel(a)])[None, :].astype(jnp.float32)
    return net_forward_batched(x, w_packed, b_hidden, bq)


def init_params(key, num_input, hidden_units):
    """Matches torch.nn.Linear default init (uniform +-1/sqrt(fan_in)).

    Weights stored as [in_features, out_features]; biases as [out_features].
    """
    dims = [num_input] + list(hidden_units) + [1]
    params = []
    for i in range(len(dims) - 1):
        fan_in, fan_out = dims[i], dims[i + 1]
        key, kw, kb = jax.random.split(key, 3)
        bound = 1.0 / (fan_in ** 0.5)
        w = jax.random.uniform(kw, (fan_in, fan_out), jnp.float32, -bound, bound)
        b = jax.random.uniform(kb, (fan_out,), jnp.float32, -bound, bound)
        params.append((w, b))
    return params


def pack_params(params):
    """Pack layers into zero-padded slabs for the kernel.

    Layers 0-2 are stored [in, out]; the final qvalue layer is stored
    TRANSPOSED ([out, in], row 0) so the kernel can emit a lane-dense q row
    straight from the MXU. Its bias is returned as a separate (1,) SMEM scalar.
    """
    # TODO(synk): on v5e, cast w_packed to bfloat16 (keep f32 accumulation and
    # f32 bias/activation math) to ~3x MXU throughput and halve the slab size.
    assert len(params) == NUM_LAYERS
    w_packed = jnp.zeros((NUM_LAYERS, PAD, PAD), jnp.float32)
    b_hidden = jnp.zeros((NUM_LAYERS - 1, 1, PAD), jnp.float32)
    for idx, (w, b) in enumerate(params[:-1]):
        w_packed = w_packed.at[idx, :w.shape[0], :w.shape[1]].set(w)
        b_hidden = b_hidden.at[idx, 0, :b.shape[-1]].set(jnp.ravel(b))
    wq, bq = params[-1]
    w_packed = w_packed.at[NUM_LAYERS - 1, :wq.shape[1], :wq.shape[0]].set(wq.T)
    bq = jnp.ravel(bq).astype(jnp.float32)               # shape (1,)
    return w_packed, b_hidden, bq


def _reference_forward_batched(x, params):
    (w1, b1), (w2, b2), (w3, b3), (wq, bq) = params
    h = _leaky_relu(x @ w1 + b1)
    h = _leaky_relu(h @ w2 + b2)
    h = _leaky_relu(h @ w3 + b3)
    return h @ wq + bq


if __name__ == "__main__":
    key = jax.random.PRNGKey(0)

    # Shapes consistent with the module: state dim 6, action dim 2
    # -> num_input = 8, hidden_units = [32, 32, 32], output (B, 1).
    s_dim, a_dim = 6, 2
    num_input = s_dim + a_dim
    hidden_units = [32, 32, 32]

    key, kp, kx, ks, ka = jax.random.split(key, 5)
    params = init_params(kp, num_input, hidden_units)
    w_packed, b_hidden, bq = pack_params(params)

    # --- Batched path (2 grid steps -> both v7x TensorCores) ----------------
    B = 256
    xb = jax.random.normal(kx, (B, num_input), jnp.float32)
    qb = net_forward_batched(xb, w_packed, b_hidden, bq)
    jax.block_until_ready(qb)
    qb_ref = _reference_forward_batched(xb, params)
    assert qb.shape == (B, 1)
    assert jnp.allclose(qb, qb_ref, atol=1e-4, rtol=1e-4), (qb[:4], qb_ref[:4])

    # --- Single-sample path (NET.forward(s, a) semantics; tiny 8-row tile) --
    s = jax.random.normal(ks, (s_dim,), jnp.float32)
    a = jax.random.normal(ka, (a_dim,), jnp.float32)
    q1 = net_forward(s, a, w_packed, b_hidden, bq)
    jax.block_until_ready(q1)
    q1_ref = _reference_forward_batched(
        jnp.concatenate([s, a])[None, :].astype(jnp.float32), params)
    assert q1.shape == (1, 1)
    assert jnp.allclose(q1, q1_ref, atol=1e-4, rtol=1e-4), (q1, q1_ref)

    print("KERNEL_OK")
</pallas_src>

<mosaic_0001>
module attributes {stable_mosaic.version = 11 : i64} {
  func.func @_mlp_kernel(%arg0: i32, %arg1: memref<128x8xf32, #tpu.memory_space<vmem>>, %arg2: memref<4x128x128xf32, #tpu.memory_space<vmem>>, %arg3: memref<3x1x128xf32, #tpu.memory_space<vmem>>, %arg4: memref<1xf32, #tpu.memory_space<smem>>, %arg5: memref<8x128xf32, #tpu.memory_space<vmem>>) attributes {dimension_semantics = [#tpu.dimension_semantics<parallel>], iteration_bounds = array<i64: 2>, scalar_prefetch = 0 : i64, scratch_operands = 0 : i64, tpu.core_type = #tpu.core_type<tc>, window_params = [{transform_indices = @transform_0, window_bounds = array<i64: 128, 8>}, {pipeline_mode = #tpu.pipeline_mode<synchronous>, transform_indices = @transform_1, window_bounds = array<i64: 4, 128, 128>}, {pipeline_mode = #tpu.pipeline_mode<synchronous>, transform_indices = @transform_2, window_bounds = array<i64: 3, 1, 128>}, {transform_indices = @transform_3, window_bounds = array<i64: 1>}, {transform_indices = @transform_4, window_bounds = array<i64: 8, 128>}]} {
    %c0 = arith.constant 0 : index
    %c0_0 = arith.constant 0 : index
    %0 = vector.load %arg1[%c0, %c0_0] : memref<128x8xf32, #tpu.memory_space<vmem>>, vector<128x8xf32>
    %c0_1 = arith.constant 0 : index
    %c0_2 = arith.constant 0 : index
    %c0_3 = arith.constant 0 : index
    %1 = vector.load %arg2[%c0_1, %c0_2, %c0_3] : memref<4x128x128xf32, #tpu.memory_space<vmem>>, vector<1x8x128xf32>
    %2 = vector.shape_cast %1 : vector<1x8x128xf32> to vector<8x128xf32>
    %cst = arith.constant dense<0.000000e+00> : vector<128x128xf32>
    %3 = tpu.matmul %0, %2, %cst {dimension_numbers = #tpu.dot_dimension_numbers<[1], [0], [0], [1], [0, 0, 1, 1], [], []>} : vector<128x8xf32>, vector<8x128xf32>, vector<128x128xf32> -> vector<128x128xf32>
    %c0_4 = arith.constant 0 : index
    %c0_5 = arith.constant 0 : index
    %c0_6 = arith.constant 0 : index
    %4 = vector.load %arg3[%c0_4, %c0_5, %c0_6] : memref<3x1x128xf32, #tpu.memory_space<vmem>>, vector<1x1x128xf32>
    %5 = vector.shape_cast %4 : vector<1x1x128xf32> to vector<1x128xf32>
    %6 = vector.broadcast %5 : vector<1x128xf32> to vector<128x128xf32>
    %7 = arith.addf %3, %6 : vector<128x128xf32>
    %cst_7 = arith.constant 0.000000e+00 : f32
    %8 = vector.broadcast %cst_7 : f32 to vector<128x128xf32>
    %9 = arith.cmpf ogt, %7, %8 : vector<128x128xf32>
    %cst_8 = arith.constant 0.00999999977 : f32
    %10 = vector.broadcast %cst_8 : f32 to vector<128x128xf32>
    %11 = arith.mulf %10, %7 : vector<128x128xf32>
    %12 = arith.select %9, %7, %11 : vector<128x128xi1>, vector<128x128xf32>
    %c1 = arith.constant 1 : index
    %c0_9 = arith.constant 0 : index
    %c0_10 = arith.constant 0 : index
    %13 = vector.load %arg2[%c1, %c0_9, %c0_10] : memref<4x128x128xf32, #tpu.memory_space<vmem>>, vector<1x128x128xf32>
    %14 = vector.shape_cast %13 : vector<1x128x128xf32> to vector<128x128xf32>
    %cst_11 = arith.constant dense<0.000000e+00> : vector<128x128xf32>
    %15 = tpu.matmul %12, %14, %cst_11 {dimension_numbers = #tpu.dot_dimension_numbers<[1], [0], [0], [1], [0, 0, 1, 1], [], []>} : vector<128x128xf32>, vector<128x128xf32>, vector<128x128xf32> -> vector<128x128xf32>
    %c1_12 = arith.constant 1 : index
    %c0_13 = arith.constant 0 : index
    %c0_14 = arith.constant 0 : index
    %16 = vector.load %arg3[%c1_12, %c0_13, %c0_14] : memref<3x1x128xf32, #tpu.memory_space<vmem>>, vector<1x1x128xf32>
    %17 = vector.shape_cast %16 : vector<1x1x128xf32> to vector<1x128xf32>
    %18 = vector.broadcast %17 : vector<1x128xf32> to vector<128x128xf32>
    %19 = arith.addf %15, %18 : vector<128x128xf32>
    %cst_15 = arith.constant 0.000000e+00 : f32
    %20 = vector.broadcast %cst_15 : f32 to vector<128x128xf32>
    %21 = arith.cmpf ogt, %19, %20 : vector<128x128xf32>
    %cst_16 = arith.constant 0.00999999977 : f32
    %22 = vector.broadcast %cst_16 : f32 to vector<128x128xf32>
    %23 = arith.mulf %22, %19 : vector<128x128xf32>
    %24 = arith.select %21, %19, %23 : vector<128x128xi1>, vector<128x128xf32>
    %c2 = arith.constant 2 : index
    %c0_17 = arith.constant 0 : index
    %c0_18 = arith.constant 0 : index
    %25 = vector.load %arg2[%c2, %c0_17, %c0_18] : memref<4x128x128xf32, #tpu.memory_space<vmem>>, vector<1x128x128xf32>
    %26 = vector.shape_cast %25 : vector<1x128x128xf32> to vector<128x128xf32>
    %cst_19 = arith.constant dense<0.000000e+00> : vector<128x128xf32>
    %27 = tpu.matmul %24, %26, %cst_19 {dimension_numbers = #tpu.dot_dimension_numbers<[1], [0], [0], [1], [0, 0, 1, 1], [], []>} : vector<128x128xf32>, vector<128x128xf32>, vector<128x128xf32> -> vector<128x128xf32>
    %c2_20 = arith.constant 2 : index
    %c0_21 = arith.constant 0 : index
    %c0_22 = arith.constant 0 : index
    %28 = vector.load %arg3[%c2_20, %c0_21, %c0_22] : memref<3x1x128xf32, #tpu.memory_space<vmem>>, vector<1x1x128xf32>
    %29 = vector.shape_cast %28 : vector<1x1x128xf32> to vector<1x128xf32>
    %30 = vector.broadcast %29 : vector<1x128xf32> to vector<128x128xf32>
    %31 = arith.addf %27, %30 : vector<128x128xf32>
    %cst_23 = arith.constant 0.000000e+00 : f32
    %32 = vector.broadcast %cst_23 : f32 to vector<128x128xf32>
    %33 = arith.cmpf ogt, %31, %32 : vector<128x128xf32>
    %cst_24 = arith.constant 0.00999999977 : f32
    %34 = vector.broadcast %cst_24 : f32 to vector<128x128xf32>
    %35 = arith.mulf %34, %31 : vector<128x128xf32>
    %36 = arith.select %33, %31, %35 : vector<128x128xi1>, vector<128x128xf32>
    %c3 = arith.constant 3 : index
    %c0_25 = arith.constant 0 : index
    %c0_26 = arith.constant 0 : index
    %37 = vector.load %arg2[%c3, %c0_25, %c0_26] : memref<4x128x128xf32, #tpu.memory_space<vmem>>, vector<1x8x128xf32>
    %38 = vector.shape_cast %37 : vector<1x8x128xf32> to vector<8x128xf32>
    %cst_27 = arith.constant dense<0.000000e+00> : vector<8x128xf32>
    %39 = tpu.matmul %38, %36, %cst_27 {dimension_numbers = #tpu.dot_dimension_numbers<[1], [1], [0], [0], [0, 0, 1, 0], [], []>} : vector<8x128xf32>, vector<128x128xf32>, vector<8x128xf32> -> vector<8x128xf32>
    %c0_28 = arith.constant 0 : index
    %40 = memref.load %arg4[%c0_28] : memref<1xf32, #tpu.memory_space<smem>>
    %41 = vector.broadcast %40 : f32 to vector<8x128xf32>
    %42 = arith.addf %39, %41 : vector<8x128xf32>
    %c0_29 = arith.constant 0 : index
    %c0_30 = arith.constant 0 : index
    %43 = vector.load %arg5[%c0_29, %c0_30] : memref<8x128xf32, #tpu.memory_space<vmem>>, vector<8x128xf32>
    tpu.vector_store %arg5[%c0_29, %c0_30], %42 {strides = array<i32>} : memref<8x128xf32, #tpu.memory_space<vmem>>, vector<8x128xf32>,
    return
  }
  func.func @transform_0(%arg0: i32) -> (i32, i32) {
    %c0_i32 = arith.constant 0 : i32
    %c0_i32_0 = arith.constant 0 : i32
    return %arg0, %c0_i32 : i32, i32
  }
  func.func @transform_1(%arg0: i32) -> (i32, i32, i32) {
    %c0_i32 = arith.constant 0 : i32
    %c0_i32_0 = arith.constant 0 : i32
    %c0_i32_1 = arith.constant 0 : i32
    %c0_i32_2 = arith.constant 0 : i32
    return %c0_i32, %c0_i32_0, %c0_i32_1 : i32, i32, i32
  }
  func.func @transform_2(%arg0: i32) -> (i32, i32, i32) {
    %c0_i32 = arith.constant 0 : i32
    %c0_i32_0 = arith.constant 0 : i32
    %c0_i32_1 = arith.constant 0 : i32
    %c0_i32_2 = arith.constant 0 : i32
    return %c0_i32, %c0_i32_0, %c0_i32_1 : i32, i32, i32
  }
  func.func @transform_3(%arg0: i32) -> i32 {
    %c0_i32 = arith.constant 0 : i32
    %c0_i32_0 = arith.constant 0 : i32
    return %c0_i32 : i32
  }
  func.func @transform_4(%arg0: i32) -> (i32, i32) {
    %c0_i32 = arith.constant 0 : i32
    %c0_i32_0 = arith.constant 0 : i32
    return %c0_i32, %arg0 : i32, i32
  }
}

</mosaic_0001>

<bundles_post_ra>
// kernel: tpu_custom_call.1
= control target key start
LH: loop header
LB: loop body
LE: loop exit
PB: predicated region body
PF: predicated region fallthrough
CT: control target
= control target key end

     0   :  { %s1199_s0 = inlined_call_operand.vmem [shape: f32[256,8], index: 0, kind: input, shape index: {}]   ;;  %s1200_s1 = inlined_call_operand.hbm [shape: f32[4,128,128], index: 1, kind: input, shape index: {}]   ;;  %s1201_s2 = inlined_call_operand.vmem [shape: f32[3,1,128], index: 2, kind: input, shape index: {}]   ;;  %s1202_s3 = inlined_call_operand.<no memory space> [shape: f32[1], index: 3, kind: input, shape index: {}]   ;;  %s1203_s4 = inlined_call_operand.hbm [shape: f32[8,256], index: 4, kind: output, shape index: {}]  }
   0x1   :  { %9 = sst [smem:[#allocation2]] %s1202_s3 }
   0x2   :  { %10 = vsyncpa [#allocation4], 0 }
   0x3   :  { %11 = vsyncpa [#allocation5], 0 }
   0x4   :  { %13 = vsyncpa [#allocation5 + $0x1], 0  ;;  %s996_s17 = smov 0   ;;  %s998_s18 = smov 0  }
   0x5   :  { %s1000_s19 = smov 0   ;;  %s1002_s20 = smov 0  }
   0x6 LB: > { %s1017_s3 = sadd.s32 4294967295, %s963_s20   ;;  %s781_s21 = sadd.s32 4294967294, %s963_s20   ;;  %s963_s20 = sphi %s1002_s20, %s1209_s20   ;;  %s959_s19 = sphi %s1000_s19, %s1208_s19   ;;  %s955_s18 = sphi %s998_s18, %s1207_s18   ;;  %s951_s17 = sphi %s996_s17, %s1206_s17  }
   0x7   : > { %s1021_s22 = sadd.s32 1, %s963_s20   ;;  %s115_s23 = sadd.s32 1, %s959_s19 }
   0x8   : > { %s112_s24 = ssub.s32 %s963_s20, %s1021_s22  ;;  %p125_p0 = scmp.ne.s32.totalorder %s959_s19, %s955_s18 }
   0x9   : > { %p113_p1 = scmp.eq.s32.totalorder %s112_s24, 0  ;;  %p126_p2 = scmp.eq.s32.totalorder %s1017_s3, 1 }
   0xa   : > { %p131_p3 = scmp.ne.s32.totalorder %s955_s18, %s951_s17  ;;  %p132_p4 = scmp.eq.s32.totalorder %s781_s21, 1 }
   0xb   : > { %s1032_s25 = scalar_select %p113_p1, %s959_s19, %s115_s23  }
   0xc   : > { %p1034_p5 = por %p126_p2, %p125_p0  ;;  %p1038_p6 = por %p132_p4, %p131_p3 }
   0xd   : > { %p782_p7 = scmp.ge.s32.totalorder %s963_s20, 1  ;;  %p139_p8 = scmp.lt.s32.totalorder %s963_s20, 3 }
   0xe   : > { %p826_p9 = scmp.eq.s32.totalorder %s1017_s3, 0  ;;  %s150_s30 = sshll.u32 %s1200_s1, 4  ;;  %s151_s30 = int_to_ptr.hbm [resolvable:$true] %s150_s30 }
   0xf   : > { %p140_p10 = pnand %p782_p7, %p139_p8  ;;  %s965_s5 = smov [#allocation3]  }
  0x10   : > { %s152_s6 = sshll.u32 %s965_s5, 4  ;;  %s966_s7 = smov 128   ;;  %s153_s6 = int_to_ptr.vmem [resolvable:$true] %s152_s6 }
  0x11   : > { %p818_p11 = pneg %p140_p10  ;;  %s967_s8 = smov 8  }
  0x12   : > { %183 = sbr.rel (%p140_p10) target bundleno = 750 (0x2ee), region = 36 }
  0x13   : > { %p819_p12 = pnand %p826_p9, %p818_p11 }
  0x15   : > { %821 = dma.hbm_to_vmem [thread:$0]  (!%p819_p12), %s151_s30, 8192, %s153_s6, [#allocation4], %s966_s7, %s966_s7, %s967_s8  }
  0x17   : > { %942 = dma.done.wait (%p826_p9), [#allocation4], 8192  }
  0x18   : > { %944 = vsyncadd (%p826_p9), [#allocation4], 4294959104  ;;  %s788_s9 = sshll.u32 %s1017_s3, 4  ;;  %vm237_vm0 = vcmask 64512   ;;  %v232_v0 = vld [vmem:[#allocation3] sm:$0xff]  ;;  %v415_v10 = vld [vmem:[#allocation3 + $0xf8] sm:$0xff] }
  0x19   : > { %p211_p13 = scmp.lt.s32.totalorder %s788_s9, 31  ;;  %301 = vmatpush.msra.mxu0 %v232_v0  ;;  %v414_v11 = vld [vmem:[#allocation3 + $0xf0] sm:$0xff]  ;;  %421 = vmatpush.msra.mxu1 %v415_v10  ;;  %v413_v13 = vld [vmem:[#allocation3 + $0xe8] sm:$0xff]  ;;  %v412_v14 = vld [vmem:[#allocation3 + $0xe0] sm:$0xff]  ;;  %s207_s28 = sand.u32 1, %s955_s18  }
  0x1a   : > { %v411_v15 = vld [vmem:[#allocation3 + $0xd8] sm:$0xff]  ;;  %v410_v16 = vld [vmem:[#allocation3 + $0xd0] sm:$0xff]  ;;  %v409_v18 = vld [vmem:[#allocation3 + $0xc8] sm:$0xff]  ;;  %s671_s29 = sld [smem:[#allocation2]]  ;;  %s787_s30 = sshll.u32 %s207_s28, 3 }
  0x1b   : > { %s1211_s9 = smov (!%p211_p13, %s788_s9), 31  ;;  %422 = vmatpush.msra.mxu1 %v414_v11  ;;  %v408_v19 = vld [vmem:[#allocation3 + $0xc0] sm:$0xff]  ;;  %v407_v20 = vld [vmem:[#allocation3 + $0xb8] sm:$0xff]  ;;  %v406_v21 = vld [vmem:[#allocation3 + $0xb0] sm:$0xff]  ;;  %s809_s5 = sshll.u32 %s1017_s3, 3 }
  0x1c   : > { %s789_s10 = sshll.u32 %s1211_s9, 3  ;;  %v405_v23 = vld [vmem:[#allocation3 + $0xa8] sm:$0xff]  ;;  %v404_v24 = vld [vmem:[#allocation3 + $0xa0] sm:$0xff]  ;;  %v403_v25 = vld [vmem:[#allocation3 + $0x98] sm:$0xff]  ;;  %s705_s8 = scalar_lea.hbm %s1203_s4, %s809_s5 }
  0x1d   : > { %s1058_s13 = scalar_lea.vmem %s1199_s0, %s789_s10  ;;  %423 = vmatpush.msra.mxu1 %v413_v13  ;;  %v402_v27 = vld [vmem:[#allocation3 + $0x90] sm:$0xff]  ;;  %v401_v28 = vld [vmem:[#allocation3 + $0x88] sm:$0xff]  ;;  %v400_v29 = vld [vmem:[#allocation3 + $0x80] sm:$0xff]  ;;  %s209_s9 = scalar_lea.vmem [#allocation6], %s787_s30 }
  0x1e   : > { %v216_v1 = vld [vmem:[%s1058_s13] sm:$0xff]  ;;  %v217_v2 = vld [vmem:[%s1058_s13 + $0x8] sm:$0xff]  ;;  %v218_v3 = vld [vmem:[%s1058_s13 + $0x10] sm:$0xff]  ;;  %s707_s10 = sshll.u32 %s209_s9, 4  ;;  %s709_s11 = sshll.u32 %s705_s8, 4  ;;  %s708_s10 = int_to_ptr.vmem [resolvable:$true] %s707_s10  ;;  %s710_s11 = int_to_ptr.hbm [resolvable:$true] %s709_s11 }
  0x1f   : > { %790 = vmatmul.msk.f32.vlgmr.msra.gmra.mxu0 %vm237_vm0, %v216_v1  ;;  %v219_v4 = vld [vmem:[%s1058_s13 + $0x18] sm:$0xff]  ;;  %v220_v5 = vld [vmem:[%s1058_s13 + $0x20] sm:$0xff]  ;;  %v221_v6 = vld [vmem:[%s1058_s13 + $0x28] sm:$0xff]  ;;  %424 = vmatpush.msra.mxu1 %v412_v14  ;;  %s695_s12 = scalar_lea.sflag [#allocation5], %s207_s28  ;;  %s917_s16 = scalar_lea.hbm %s1203_s4, 16 }
  0x20   : > { %v222_v7 = vld [vmem:[%s1058_s13 + $0x30] sm:$0xff]  ;;  %v223_v8 = vld [vmem:[%s1058_s13 + $0x38] sm:$0xff]  ;;  %v224_v9 = vld [vmem:[%s1058_s13 + $0x40] sm:$0xff] }
  0x21   : > { %v225_v12 = vld [vmem:[%s1058_s13 + $0x48] sm:$0xff]  ;;  %425 = vmatpush.msra.mxu1 %v411_v15  ;;  %v226_v17 = vld [vmem:[%s1058_s13 + $0x50] sm:$0xff]  ;;  %v227_v22 = vld [vmem:[%s1058_s13 + $0x58] sm:$0xff] }
  0x22   : > { %v228_v26 = vld [vmem:[%s1058_s13 + $0x60] sm:$0xff]  ;;  %v229_v30 = vld [vmem:[%s1058_s13 + $0x68] sm:$0xff]  ;;  %v230_v31 = vld [vmem:[%s1058_s13 + $0x70] sm:$0xff] }
  0x23   : > { %426 = vmatpush.msra.mxu1 %v410_v16  ;;  %v231_v32 = vld [vmem:[%s1058_s13 + $0x78] sm:$0xff]  ;;  %v1095_v33 = vld [vmem:[%s1201_s2] ss:$0 sm:$0xff]  ;;  %s911_s13 = sshra.s32 %s710_s11, 4  ;;  %s912_s13 = int_to_ptr.hbm [resolvable:$true] %s911_s13 }
  0x24   : > { %v547_v13 = vld [vmem:[#allocation3 + $0x160] sm:$0xff]  ;;  %v546_v16 = vld [vmem:[#allocation3 + $0x158] sm:$0xff]  ;;  %s913_s14 = scalar_lea.hbm %s912_s13, 8  ;;  %p918_p3 = scmp.lt.s32.totalorder %s912_s13, %s1203_s4 }
  0x25   : > { %427 = vmatpush.msra.mxu1 %v409_v18  ;;  %p914_p0 = scmp.ne.s32.totalorder %s912_s13, %s913_s14  ;;  %p919_p4 = scmp.lt.s32.totalorder %s917_s16, %s913_s14 }
  0x27   : > { %791 = vmatmul.msk.f32.gmra.mxu0 %vm237_vm0, %v217_v2  ;;  %428 = vmatpush.msra.mxu1 %v408_v19  ;;  %p915_p1 = pnand %p914_p0, %p1034_p5  ;;  %p920_p7 = por %p919_p4, %p918_p3 }
  0x29   : > { %429 = vmatpush.msra.mxu1 %v407_v20  ;;  %v544_v20 = vld [vmem:[#allocation3 + $0x148] sm:$0xff]  ;;  %p916_p2 = pneg %p915_p1 }
  0x2b   : > { %430 = vmatpush.msra.mxu1 %v406_v21  ;;  %v543_v21 = vld [vmem:[#allocation3 + $0x140] sm:$0xff]  ;;  %p921_p8 = pnand %p920_p7, %p916_p2 }
  0x2d   : > { %431 = vmatpush.msra.mxu1 %v405_v23 }
  0x2f   : > { %792 = vmatmul.msk.f32.gmra.mxu0 %vm237_vm0, %v218_v3  ;;  %432 = vmatpush.msra.mxu1 %v404_v24  ;;  %v542_v24 = vld [vmem:[#allocation3 + $0x138] sm:$0xff] }
  0x31   : > { %433 = vmatpush.msra.mxu1 %v403_v25  ;;  %v541_v25 = vld [vmem:[#allocation3 + $0x130] sm:$0xff] }
  0x33   : > { %434 = vmatpush.msra.mxu1 %v402_v27 }
  0x35   : > { %435 = vmatpush.msra.mxu1 %v401_v28  ;;  %v540_v28 = vld [vmem:[#allocation3 + $0x128] sm:$0xff] }
  0x37   : > { %793 = vmatmul.msk.f32.gmra.mxu0 %vm237_vm0, %v219_v4  ;;  %436 = vmatpush.msra.mxu1 %v400_v29  ;;  %v539_v29 = vld [vmem:[#allocation3 + $0x120] sm:$0xff] }
  0x3f   : > { %794 = vmatmul.msk.f32.gmra.mxu0 %vm237_vm0, %v220_v5 }
  0x47   : > { %795 = vmatmul.msk.f32.gmra.mxu0 %vm237_vm0, %v221_v6 }
  0x4f   : > { %796 = vmatmul.msk.f32.gmra.mxu0 %vm237_vm0, %v222_v7 }
  0x57   : > { %797 = vmatmul.msk.f32.gmra.mxu0 %vm237_vm0, %v223_v8  ;;  %v550_v8 = vld [vmem:[#allocation3 + $0x178] sm:$0xff] }
  0x58   : > { %556 = vmatpush.msra.mxu2 %v550_v8 }
  0x5f   : > { %798 = vmatmul.msk.f32.gmra.mxu0 %vm237_vm0, %v224_v9  ;;  %v549_v9 = vld [vmem:[#allocation3 + $0x170] sm:$0xff] }
  0x60   : > { %557 = vmatpush.msra.mxu2 %v549_v9 }
  0x67   : > { %799 = vmatmul.msk.f32.gmra.mxu0 %vm237_vm0, %v225_v12  ;;  %v548_v12 = vld [vmem:[#allocation3 + $0x168] sm:$0xff] }
  0x68   : > { %558 = vmatpush.msra.mxu2 %v548_v12 }
  0x6a   : > { %559 = vmatpush.msra.mxu2 %v547_v13 }
  0x6c   : > { %560 = vmatpush.msra.mxu2 %v546_v16 }
  0x6f   : > { %800 = vmatmul.msk.f32.gmra.mxu0 %vm237_vm0, %v226_v17  ;;  %v545_v17 = vld [vmem:[#allocation3 + $0x150] sm:$0xff] }
  0x70   : > { %561 = vmatpush.msra.mxu2 %v545_v17 }
  0x72   : > { %562 = vmatpush.msra.mxu2 %v544_v20 }
  0x74   : > { %563 = vmatpush.msra.mxu2 %v543_v21 }
  0x76   : > { %564 = vmatpush.msra.mxu2 %v542_v24 }
  0x77   : > { %801 = vmatmul.msk.f32.gmra.mxu0 %vm237_vm0, %v227_v22 }
  0x78   : > { %565 = vmatpush.msra.mxu2 %v541_v25 }
  0x7a   : > { %566 = vmatpush.msra.mxu2 %v540_v28 }
  0x7c   : > { %567 = vmatpush.msra.mxu2 %v539_v29 }
  0x7f   : > { %802 = vmatmul.msk.f32.gmra.mxu0 %vm237_vm0, %v228_v26 }
  0x87   : > { %803 = vmatmul.msk.f32.gmra.mxu0 %vm237_vm0, %v229_v30  ;;  %v538_v30 = vld [vmem:[#allocation3 + $0x118] sm:$0xff] }
  0x88   : > { %568 = vmatpush.msra.mxu2 %v538_v30 }
  0x8f   : > { %804 = vmatmul.msk.f32.gmra.mxu0 %vm237_vm0, %v230_v31 }
  0x97   : > { %805 = vmatmul.msk.f32.gmra.mxu0 %vm237_vm0, %v231_v32 }
  0x9c   : > { %v303_v34 = vpop.f32.mrf.mxu0 }
  0x9d   : > { %v304_v35 = vadd.f32 %v1095_v33, %v303_v34 }
  0x9f   : > { %vm351_vm1 = vcmp.gt.f32.partialorder %v304_v35, 0.0  ;;  %v367_v36 = vmul.f32 0.01, %v304_v35 }
  0xa1   : > { %v383_v37 = vsel %vm351_vm1, %v304_v35, %v367_v36  ;;  %v537_v35 = vld [vmem:[#allocation3 + $0x110] sm:$0xff]  ;;  %v536_v36 = vld [vmem:[#allocation3 + $0x108] sm:$0xff] }
  0xa2   : > { %437 = vmatmul.f32.vlgmr.msra.gmra.mxu1 %v383_v37  ;;  %569 = vmatpush.msra.mxu2 %v537_v35 }
  0xa4   : > { %v306_v38 = vpop.f32.mrf.mxu0  ;;  %570 = vmatpush.msra.mxu2 %v536_v36 }
  0xa5   : > { %v307_v39 = vadd.f32 %v1095_v33, %v306_v38  ;;  %v535_v38 = vld [vmem:[#allocation3 + $0x100] sm:$0xff] }
  0xa6   : > { %571 = vmatpush.msra.mxu2 %v535_v38 }
  0xa7   : > { %vm352_vm2 = vcmp.gt.f32.partialorder %v307_v39, 0.0  ;;  %v368_v40 = vmul.f32 0.01, %v307_v39 }
  0xa9   : > { %v384_v41 = vsel %vm352_vm2, %v307_v39, %v368_v40 }
  0xaa   : > { %440 = vmatmul.f32.gmra.mxu1 %v384_v41 }
  0xac   : > { %v309_v42 = vpop.f32.mrf.mxu0 }
  0xad   : > { %v310_v43 = vadd.f32 %v1095_v33, %v309_v42 }
  0xaf   : > { %vm353_vm3 = vcmp.gt.f32.partialorder %v310_v43, 0.0  ;;  %v369_v44 = vmul.f32 0.01, %v310_v43 }
  0xb1   : > { %v385_v45 = vsel %vm353_vm3, %v310_v43, %v369_v44 }
  0xb2   : > { %443 = vmatmul.f32.gmra.mxu1 %v385_v45 }
  0xb4   : > { %v312_v46 = vpop.f32.mrf.mxu0 }
  0xb5   : > { %v313_v47 = vadd.f32 %v1095_v33, %v312_v46 }
  0xb7   : > { %vm354_vm4 = vcmp.gt.f32.partialorder %v313_v47, 0.0  ;;  %v370_v48 = vmul.f32 0.01, %v313_v47 }
  0xb9   : > { %v386_v49 = vsel %vm354_vm4, %v313_v47, %v370_v48 }
  0xba   : > { %446 = vmatmul.f32.gmra.mxu1 %v386_v49 }
  0xbc   : > { %v315_v50 = vpop.f32.mrf.mxu0 }
  0xbd   : > { %v316_v51 = vadd.f32 %v1095_v33, %v315_v50 }
  0xbf   : > { %vm355_vm5 = vcmp.gt.f32.partialorder %v316_v51, 0.0  ;;  %v371_v52 = vmul.f32 0.01, %v316_v51 }
  0xc1   : > { %v387_v53 = vsel %vm355_vm5, %v316_v51, %v371_v52  ;;  %v1116_v51 = vld [vmem:[%s1201_s2 + $0x1] ss:$0 sm:$0xff] }
  0xc2   : > { %449 = vmatmul.f32.gmra.mxu1 %v387_v53 }
  0xc4   : > { %v318_v54 = vpop.f32.mrf.mxu0 }
  0xc5   : > { %v319_v55 = vadd.f32 %v1095_v33, %v318_v54 }
  0xc7   : > { %vm356_vm6 = vcmp.gt.f32.partialorder %v319_v55, 0.0  ;;  %v372_v56 = vmul.f32 0.01, %v319_v55 }
  0xc9   : > { %v388_v57 = vsel %vm356_vm6, %v319_v55, %v372_v56 }
  0xca   : > { %452 = vmatmul.f32.gmra.mxu1 %v388_v57 }
  0xcc   : > { %v321_v58 = vpop.f32.mrf.mxu0 }
  0xcd   : > { %v322_v59 = vadd.f32 %v1095_v33, %v321_v58 }
  0xcf   : > { %vm357_vm7 = vcmp.gt.f32.partialorder %v322_v59, 0.0  ;;  %v373_v60 = vmul.f32 0.01, %v322_v59 }
  0xd1   : > { %v389_v61 = vsel %vm357_vm7, %v322_v59, %v373_v60 }
  0xd2   : > { %455 = vmatmul.f32.gmra.mxu1 %v389_v61 }
  0xd4   : > { %v324_v62 = vpop.f32.mrf.mxu0 }
  0xd5   : > { %v325_v63 = vadd.f32 %v1095_v33, %v324_v62 }
  0xd7   : > { %vm358_vm8 = vcmp.gt.f32.partialorder %v325_v63, 0.0  ;;  %v374_v0 = vmul.f32 0.01, %v325_v63 }
  0xd9   : > { %v390_v1 = vsel %vm358_vm8, %v325_v63, %v374_v0 }
  0xda   : > { %458 = vmatmul.f32.gmra.mxu1 %v390_v1 }
  0xdc   : > { %v327_v2 = vpop.f32.mrf.mxu0 }
  0xdd   : > { %v328_v3 = vadd.f32 %v1095_v33, %v327_v2 }
  0xdf   : > { %vm359_vm9 = vcmp.gt.f32.partialorder %v328_v3, 0.0  ;;  %v375_v4 = vmul.f32 0.01, %v328_v3 }
  0xe1   : > { %v391_v5 = vsel %vm359_vm9, %v328_v3, %v375_v4 }
  0xe2   : > { %461 = vmatmul.f32.gmra.mxu1 %v391_v5 }
  0xe4   : > { %v330_v6 = vpop.f32.mrf.mxu0 }
  0xe5   : > { %v331_v7 = vadd.f32 %v1095_v33, %v330_v6 }
  0xe7   : > { %vm360_vm10 = vcmp.gt.f32.partialorder %v331_v7, 0.0  ;;  %v376_v10 = vmul.f32 0.01, %v331_v7 }
  0xe9   : > { %v392_v11 = vsel %vm360_vm10, %v331_v7, %v376_v10 }
  0xea   : > { %464 = vmatmul.f32.gmra.mxu1 %v392_v11 }
  0xec   : > { %v333_v14 = vpop.f32.mrf.mxu0 }
  0xed   : > { %v334_v15 = vadd.f32 %v1095_v33, %v333_v14 }
  0xef   : > { %vm361_vm11 = vcmp.gt.f32.partialorder %v334_v15, 0.0  ;;  %v377_v18 = vmul.f32 0.01, %v334_v15 }
  0xf1   : > { %v393_v19 = vsel %vm361_vm11, %v334_v15, %v377_v18 }
  0xf2   : > { %467 = vmatmul.f32.gmra.mxu1 %v393_v19 }
  0xf4   : > { %v336_v22 = vpop.f32.mrf.mxu0 }
  0xf5   : > { %v337_v23 = vadd.f32 %v1095_v33, %v336_v22 }
  0xf7   : > { %vm362_vm12 = vcmp.gt.f32.partialorder %v337_v23, 0.0  ;;  %v378_v26 = vmul.f32 0.01, %v337_v23 }
  0xf9   : > { %v394_v27 = vsel %vm362_vm12, %v337_v23, %v378_v26 }
  0xfa   : > { %470 = vmatmul.f32.gmra.mxu1 %v394_v27 }
  0xfc   : > { %v339_v31 = vpop.f32.mrf.mxu0 }
  0xfd   : > { %v340_v32 = vadd.f32 %v1095_v33, %v339_v31 }
  0xff   : > { %vm363_vm13 = vcmp.gt.f32.partialorder %v340_v32, 0.0  ;;  %v379_v34 = vmul.f32 0.01, %v340_v32 }
 0x101   : > { %v395_v37 = vsel %vm363_vm13, %v340_v32, %v379_v34 }
 0x102   : > { %473 = vmatmul.f32.gmra.mxu1 %v395_v37 }
 0x104   : > { %v342_v39 = vpop.f32.mrf.mxu0 }
 0x105   : > { %v343_v40 = vadd.f32 %v1095_v33, %v342_v39 }
 0x107   : > { %vm364_vm14 = vcmp.gt.f32.partialorder %v343_v40, 0.0  ;;  %v380_v41 = vmul.f32 0.01, %v343_v40 }
 0x109   : > { %v396_v42 = vsel %vm364_vm14, %v343_v40, %v380_v41 }
 0x10a   : > { %476 = vmatmul.f32.gmra.mxu1 %v396_v42 }
 0x10c   : > { %v345_v43 = vpop.f32.mrf.mxu0 }
 0x10d   : > { %v346_v44 = vadd.f32 %v1095_v33, %v345_v43 }
 0x10f   : > { %vm365_vm15 = vcmp.gt.f32.partialorder %v346_v44, 0.0  ;;  %v381_v45 = vmul.f32 0.01, %v346_v44 }
 0x111   : > { %v397_v46 = vsel %vm365_vm15, %v346_v44, %v381_v45 }
 0x112   : > { %479 = vmatmul.f32.gmra.mxu1 %v397_v46 }
 0x114   : > { %v348_v47 = vpop.f32.mrf.mxu0 }
 0x115   : > { %v349_v48 = vadd.f32 %v1095_v33, %v348_v47 }
 0x117   : > { %vm366_vm0 = vcmp.gt.f32.partialorder %v349_v48, 0.0  ;;  %v382_v49 = vmul.f32 0.01, %v349_v48 }
 0x119   : > { %v398_v50 = vsel %vm366_vm0, %v349_v48, %v382_v49 }
 0x11a   : > { %482 = vmatmul.f32.gmra.mxu1 %v398_v50 }
 0x11f   : > { %v438_v52 = vpop.f32.mrf.mxu1 }
 0x120   : > { %v439_v53 = vadd.f32 %v1116_v51, %v438_v52 }
 0x122   : > { %vm486_vm1 = vcmp.gt.f32.partialorder %v439_v53, 0.0  ;;  %v502_v54 = vmul.f32 0.01, %v439_v53 }
 0x124   : > { %v518_v55 = vsel %vm486_vm1, %v439_v53, %v502_v54 }
 0x125   : > { %572 = vmatmul.f32.vlgmr.msra.gmra.mxu2 %v518_v55 }
 0x127   : > { %v441_v56 = vpop.f32.mrf.mxu1 }
 0x128   : > { %v442_v57 = vadd.f32 %v1116_v51, %v441_v56 }
 0x12a   : > { %vm487_vm2 = vcmp.gt.f32.partialorder %v442_v57, 0.0  ;;  %v503_v33 = vmul.f32 0.01, %v442_v57 }
 0x12c   : > { %v519_v58 = vsel %vm487_vm2, %v442_v57, %v503_v33 }
 0x12d   : > { %575 = vmatmul.f32.gmra.mxu2 %v519_v58 }
 0x12f   : > { %v444_v59 = vpop.f32.mrf.mxu1 }
 0x130   : > { %v445_v60 = vadd.f32 %v1116_v51, %v444_v59 }
 0x132   : > { %vm488_vm3 = vcmp.gt.f32.partialorder %v445_v60, 0.0  ;;  %v504_v61 = vmul.f32 0.01, %v445_v60 }
 0x134   : > { %v520_v62 = vsel %vm488_vm3, %v445_v60, %v504_v61 }
 0x135   : > { %578 = vmatmul.f32.gmra.mxu2 %v520_v62 }
 0x137   : > { %v447_v63 = vpop.f32.mrf.mxu1 }
 0x138   : > { %v448_v0 = vadd.f32 %v1116_v51, %v447_v63 }
 0x13a   : > { %vm489_vm4 = vcmp.gt.f32.partialorder %v448_v0, 0.0  ;;  %v505_v1 = vmul.f32 0.01, %v448_v0 }
 0x13c   : > { %v521_v2 = vsel %vm489_vm4, %v448_v0, %v505_v1 }
 0x13d   : > { %581 = vmatmul.f32.gmra.mxu2 %v521_v2  ;;  %v1145_v2 = vld [vmem:[%s1201_s2 + $0x2] ss:$0 sm:$0xff] }
 0x13f   : > { %v450_v3 = vpop.f32.mrf.mxu1 }
 0x140   : > { %v451_v4 = vadd.f32 %v1116_v51, %v450_v3 }
 0x142   : > { %vm490_vm5 = vcmp.gt.f32.partialorder %v451_v4, 0.0  ;;  %v506_v5 = vmul.f32 0.01, %v451_v4 }
 0x144   : > { %v522_v6 = vsel %vm490_vm5, %v451_v4, %v506_v5 }
 0x145   : > { %584 = vmatmul.f32.gmra.mxu2 %v522_v6 }
 0x147   : > { %v453_v7 = vpop.f32.mrf.mxu1 }
 0x148   : > { %v454_v8 = vadd.f32 %v1116_v51, %v453_v7 }
 0x14a   : > { %vm491_vm6 = vcmp.gt.f32.partialorder %v454_v8, 0.0  ;;  %v507_v9 = vmul.f32 0.01, %v454_v8 }
 0x14c   : > { %v523_v10 = vsel %vm491_vm6, %v454_v8, %v507_v9 }
 0x14d   : > { %587 = vmatmul.f32.gmra.mxu2 %v523_v10 }
 0x14f   : > { %v456_v11 = vpop.f32.mrf.mxu1 }
 0x150   : > { %v457_v12 = vadd.f32 %v1116_v51, %v456_v11 }
 0x152   : > { %vm492_vm7 = vcmp.gt.f32.partialorder %v457_v12, 0.0  ;;  %v508_v13 = vmul.f32 0.01, %v457_v12 }
 0x154   : > { %v524_v14 = vsel %vm492_vm7, %v457_v12, %v508_v13 }
 0x155   : > { %590 = vmatmul.f32.gmra.mxu2 %v524_v14 }
 0x157   : > { %v459_v15 = vpop.f32.mrf.mxu1 }
 0x158   : > { %v460_v16 = vadd.f32 %v1116_v51, %v459_v15 }
 0x15a   : > { %vm493_vm8 = vcmp.gt.f32.partialorder %v460_v16, 0.0  ;;  %v509_v17 = vmul.f32 0.01, %v460_v16 }
 0x15c   : > { %v525_v18 = vsel %vm493_vm8, %v460_v16, %v509_v17 }
 0x15d   : > { %593 = vmatmul.f32.gmra.mxu2 %v525_v18 }
 0x15f   : > { %v462_v19 = vpop.f32.mrf.mxu1 }
 0x160   : > { %v463_v20 = vadd.f32 %v1116_v51, %v462_v19 }
 0x162   : > { %vm494_vm9 = vcmp.gt.f32.partialorder %v463_v20, 0.0  ;;  %v510_v21 = vmul.f32 0.01, %v463_v20 }
 0x164   : > { %v526_v22 = vsel %vm494_vm9, %v463_v20, %v510_v21 }
 0x165   : > { %596 = vmatmul.f32.gmra.mxu2 %v526_v22 }
 0x167   : > { %v465_v23 = vpop.f32.mrf.mxu1 }
 0x168   : > { %v466_v24 = vadd.f32 %v1116_v51, %v465_v23 }
 0x16a   : > { %vm495_vm10 = vcmp.gt.f32.partialorder %v466_v24, 0.0  ;;  %v511_v25 = vmul.f32 0.01, %v466_v24 }
 0x16c   : > { %v527_v26 = vsel %vm495_vm10, %v466_v24, %v511_v25 }
 0x16d   : > { %599 = vmatmul.f32.gmra.mxu2 %v527_v26 }
 0x16f   : > { %v468_v27 = vpop.f32.mrf.mxu1 }
 0x170   : > { %v469_v28 = vadd.f32 %v1116_v51, %v468_v27 }
 0x172   : > { %vm496_vm11 = vcmp.gt.f32.partialorder %v469_v28, 0.0  ;;  %v512_v29 = vmul.f32 0.01, %v469_v28 }
 0x174   : > { %v528_v30 = vsel %vm496_vm11, %v469_v28, %v512_v29 }
 0x175   : > { %602 = vmatmul.f32.gmra.mxu2 %v528_v30 }
 0x177   : > { %v471_v31 = vpop.f32.mrf.mxu1 }
 0x178   : > { %v472_v32 = vadd.f32 %v1116_v51, %v471_v31 }
 0x17a   : > { %vm497_vm12 = vcmp.gt.f32.partialorder %v472_v32, 0.0  ;;  %v513_v34 = vmul.f32 0.01, %v472_v32 }
 0x17c   : > { %v529_v35 = vsel %vm497_vm12, %v472_v32, %v513_v34 }
 0x17d   : > { %605 = vmatmul.f32.gmra.mxu2 %v529_v35 }
 0x17f   : > { %v474_v36 = vpop.f32.mrf.mxu1 }
 0x180   : > { %v475_v37 = vadd.f32 %v1116_v51, %v474_v36 }
 0x182   : > { %vm498_vm13 = vcmp.gt.f32.partialorder %v475_v37, 0.0  ;;  %v514_v38 = vmul.f32 0.01, %v475_v37 }
 0x184   : > { %v530_v39 = vsel %vm498_vm13, %v475_v37, %v514_v38 }
 0x185   : > { %608 = vmatmul.f32.gmra.mxu2 %v530_v39 }
 0x187   : > { %v477_v40 = vpop.f32.mrf.mxu1 }
 0x188   : > { %v478_v41 = vadd.f32 %v1116_v51, %v477_v40 }
 0x18a   : > { %vm499_vm14 = vcmp.gt.f32.partialorder %v478_v41, 0.0  ;;  %v515_v42 = vmul.f32 0.01, %v478_v41 }
 0x18c   : > { %v531_v43 = vsel %vm499_vm14, %v478_v41, %v515_v42 }
 0x18d   : > { %611 = vmatmul.f32.gmra.mxu2 %v531_v43 }
 0x18f   : > { %v480_v44 = vpop.f32.mrf.mxu1 }
 0x190   : > { %v481_v45 = vadd.f32 %v1116_v51, %v480_v44 }
 0x192   : > { %vm500_vm15 = vcmp.gt.f32.partialorder %v481_v45, 0.0  ;;  %v516_v46 = vmul.f32 0.01, %v481_v45 }
 0x194   : > { %v532_v47 = vsel %vm500_vm15, %v481_v45, %v516_v46 }
 0x195   : > { %614 = vmatmul.f32.gmra.mxu2 %v532_v47 }
 0x197   : > { %v483_v48 = vpop.f32.mrf.mxu1 }
 0x198   : > { %v484_v49 = vadd.f32 %v1116_v51, %v483_v48 }
 0x19a   : > { %vm501_vm0 = vcmp.gt.f32.partialorder %v484_v49, 0.0  ;;  %v517_v50 = vmul.f32 0.01, %v484_v49 }
 0x19c   : > { %v533_v52 = vsel %vm501_vm0, %v484_v49, %v517_v50 }
 0x19d   : > { %617 = vmatmul.f32.gmra.mxu2 %v533_v52 }
 0x1a8   : > { %v1134_v53 = vpop.f32.mrf.mxu2 }
 0x1a9   : > { %v574_v47 = vadd.f32 %v1145_v2, %v1134_v53  ;;  %v672_v53 = vstv %s671_s29 }
 0x1ab   : > { %v637_v52 = vmul.f32 0.01, %v574_v47  ;;  %vm621_vm0 = vcmp.gt.f32.partialorder %v574_v47, 0.0 }
 0x1b0   : > { %v1136_v54 = vpop.f32.mrf.mxu2 }
 0x1b1   : > { %v577_v44 = vadd.f32 %v1145_v2, %v1136_v54  ;;  %v670_v54 = vld [vmem:[#allocation3 + $0x180] sm:$0xff] }
 0x1b3   : > { %v638_v49 = vmul.f32 0.01, %v577_v44  ;;  %vm622_vm15 = vcmp.gt.f32.partialorder %v577_v44, 0.0 }
 0x1b5   : > { %v654_v50 = vsel %vm622_vm15, %v577_v44, %v638_v49 }
 0x1b8   : > { %v1138_v55 = vpop.f32.mrf.mxu2 }
 0x1b9   : > { %v580_v41 = vadd.f32 %v1145_v2, %v1138_v55  ;;  %v653_v55 = vsel %vm621_vm0, %v574_v47, %v637_v52 }
 0x1bb   : > { %v639_v46 = vmul.f32 0.01, %v580_v41  ;;  %vm623_vm14 = vcmp.gt.f32.partialorder %v580_v41, 0.0 }
 0x1bd   : > { %v655_v48 = vsel %vm623_vm14, %v580_v41, %v639_v46 }
 0x1c0   : > { %v1140_v56 = vpop.f32.mrf.mxu2 }
 0x1c1   : > { %v583_v38 = vadd.f32 %v1145_v2, %v1140_v56 }
 0x1c3   : > { %v640_v43 = vmul.f32 0.01, %v583_v38  ;;  %vm624_vm13 = vcmp.gt.f32.partialorder %v583_v38, 0.0 }
 0x1c5   : > { %v656_v45 = vsel %vm624_vm13, %v583_v38, %v640_v43 }
 0x1c8   : > { %v585_v57 = vpop.f32.mrf.mxu2 }
 0x1c9   : > { %v586_v35 = vadd.f32 %v1145_v2, %v585_v57 }
 0x1cb   : > { %v641_v40 = vmul.f32 0.01, %v586_v35  ;;  %vm625_vm12 = vcmp.gt.f32.partialorder %v586_v35, 0.0 }
 0x1cd   : > { %v657_v42 = vsel %vm625_vm12, %v586_v35, %v641_v40 }
 0x1d0   : > { %v588_v33 = vpop.f32.mrf.mxu2 }
 0x1d1   : > { %v589_v31 = vadd.f32 %v1145_v2, %v588_v33 }
 0x1d3   : > { %v642_v37 = vmul.f32 0.01, %v589_v31  ;;  %vm626_vm11 = vcmp.gt.f32.partialorder %v589_v31, 0.0 }
 0x1d5   : > { %v658_v39 = vsel %vm626_vm11, %v589_v31, %v642_v37 }
 0x1d8   : > { %v591_v58 = vpop.f32.mrf.mxu2 }
 0x1d9   : > { %v592_v28 = vadd.f32 %v1145_v2, %v591_v58 }
 0x1db   : > { %v643_v34 = vmul.f32 0.01, %v592_v28  ;;  %vm627_vm10 = vcmp.gt.f32.partialorder %v592_v28, 0.0 }
 0x1dd   : > { %v659_v36 = vsel %vm627_vm10, %v592_v28, %v643_v34 }
 0x1e0   : > { %v594_v59 = vpop.f32.mrf.mxu2 }
 0x1e1   : > { %v595_v25 = vadd.f32 %v1145_v2, %v594_v59 }
 0x1e3   : > { %v644_v30 = vmul.f32 0.01, %v595_v25  ;;  %vm628_vm9 = vcmp.gt.f32.partialorder %v595_v25, 0.0 }
 0x1e5   : > { %v660_v32 = vsel %vm628_vm9, %v595_v25, %v644_v30 }
 0x1e8   : > { %v597_v60 = vpop.f32.mrf.mxu2 }
 0x1e9   : > { %v598_v22 = vadd.f32 %v1145_v2, %v597_v60 }
 0x1eb   : > { %v645_v27 = vmul.f32 0.01, %v598_v22  ;;  %vm629_vm8 = vcmp.gt.f32.partialorder %v598_v22, 0.0 }
 0x1ed   : > { %v661_v29 = vsel %vm629_vm8, %v598_v22, %v645_v27 }
 0x1f0   : > { %v600_v61 = vpop.f32.mrf.mxu2 }
 0x1f1   : > { %v601_v19 = vadd.f32 %v1145_v2, %v600_v61 }
 0x1f3   : > { %v646_v24 = vmul.f32 0.01, %v601_v19  ;;  %vm630_vm7 = vcmp.gt.f32.partialorder %v601_v19, 0.0 }
 0x1f5   : > { %v662_v26 = vsel %vm630_vm7, %v601_v19, %v646_v24 }
 0x1f8   : > { %v603_v62 = vpop.f32.mrf.mxu2 }
 0x1f9   : > { %v604_v16 = vadd.f32 %v1145_v2, %v603_v62 }
 0x1fb   : > { %v647_v21 = vmul.f32 0.01, %v604_v16  ;;  %vm631_vm6 = vcmp.gt.f32.partialorder %v604_v16, 0.0 }
 0x1fd   : > { %v663_v23 = vsel %vm631_vm6, %v604_v16, %v647_v21 }
 0x200   : > { %v606_v51 = vpop.f32.mrf.mxu2 }
 0x201   : > { %v607_v13 = vadd.f32 %v1145_v2, %v606_v51 }
 0x203   : > { %v648_v18 = vmul.f32 0.01, %v607_v13  ;;  %vm632_vm5 = vcmp.gt.f32.partialorder %v607_v13, 0.0 }
 0x205   : > { %v664_v20 = vsel %vm632_vm5, %v607_v13, %v648_v18 }
 0x208   : > { %v609_v63 = vpop.f32.mrf.mxu2 }
 0x209   : > { %v610_v10 = vadd.f32 %v1145_v2, %v609_v63 }
 0x20b   : > { %v649_v15 = vmul.f32 0.01, %v610_v10  ;;  %vm633_vm4 = vcmp.gt.f32.partialorder %v610_v10, 0.0 }
 0x20d   : > { %v665_v17 = vsel %vm633_vm4, %v610_v10, %v649_v15 }
 0x210   : > { %v612_v0 = vpop.f32.mrf.mxu2 }
 0x211   : > { %v613_v7 = vadd.f32 %v1145_v2, %v612_v0 }
 0x213   : > { %v650_v12 = vmul.f32 0.01, %v613_v7  ;;  %vm634_vm3 = vcmp.gt.f32.partialorder %v613_v7, 0.0 }
 0x215   : > { %v666_v14 = vsel %vm634_vm3, %v613_v7, %v650_v12 }
 0x218   : > { %v615_v1 = vpop.f32.mrf.mxu2 }
 0x219   : > { %v616_v4 = vadd.f32 %v1145_v2, %v615_v1 }
 0x21b   : > { %v651_v9 = vmul.f32 0.01, %v616_v4  ;;  %vm635_vm2 = vcmp.gt.f32.partialorder %v616_v4, 0.0 }
 0x21d   : > { %v667_v11 = vsel %vm635_vm2, %v616_v4, %v651_v9 }
 0x220   : > { %v618_v3 = vpop.f32.mrf.mxu2 }
 0x221   : > { %v619_v5 = vadd.f32 %v1145_v2, %v618_v3 }
 0x223   : > { %vm636_vm1 = vcmp.gt.f32.partialorder %v619_v5, 0.0  ;;  %v652_v6 = vmul.f32 0.01, %v619_v5 }
 0x225   : > { %v668_v8 = vsel %vm636_vm1, %v619_v5, %v652_v6 }
 0x226   : > { %673 = vmatpush.xpose.msra.mxu3 %v668_v8 }
 0x22a   : > { %674 = vmatpush.xpose.msra.mxu3 %v667_v11 }
 0x22e   : > { %675 = vmatpush.xpose.msra.mxu3 %v666_v14 }
 0x232   : > { %676 = vmatpush.xpose.msra.mxu3 %v665_v17 }
 0x236   : > { %677 = vmatpush.xpose.msra.mxu3 %v664_v20 }
 0x23a   : > { %678 = vmatpush.xpose.msra.mxu3 %v663_v23 }
 0x23e   : > { %679 = vmatpush.xpose.msra.mxu3 %v662_v26 }
 0x242   : > { %680 = vmatpush.xpose.msra.mxu3 %v661_v29 }
 0x246   : > { %681 = vmatpush.xpose.msra.mxu3 %v660_v32 }
 0x24a   : > { %682 = vmatpush.xpose.msra.mxu3 %v659_v36 }
 0x24e   : > { %683 = vmatpush.xpose.msra.mxu3 %v658_v39 }
 0x252   : > { %684 = vmatpush.xpose.msra.mxu3 %v657_v42 }
 0x256   : > { %685 = vmatpush.xpose.msra.mxu3 %v656_v45 }
 0x25a   : > { %686 = vmatpush.xpose.msra.mxu3 %v655_v48 }
 0x25e   : > { %687 = vmatpush.xpose.msra.mxu3 %v654_v50 }
 0x262   : > { %688 = vmatpush.xpose.msra.mxu3 %v653_v55 }
 0x265   : > { %689 = vmatmul.f32.vlgmr.msra.gmra.mxu3 %v670_v54 }
 0x2e8   : > { %v690_v56 = vpop.f32.mrf.mxu3 }
 0x2e9   : > { %v691_v57 = vadd.f32 %v690_v56, %v672_v53 }
 0x2eb   : > { %693 = vst [vmem:[%s209_s9] sm:$0xff] %v691_v57 }
 0x2ec   : > { %924 = shalt.err (!%p921_p8)
}
 0x2ed   : > { %816 = dma.vmem_to_hbm [thread:$0]  (%p1034_p5), %s708_s10, 128, %s710_s11, %s695_s12  }
 0x2ee PF: > { %p828_p9 = scmp.ge.s32.totalorder %s963_s20, 2  ;;  %s721_s24 = sand.u32 1, %s951_s17  }
 0x2ef   : > { %s722_s28 = scalar_lea.sflag [#allocation5], %s721_s24 }
 0x2f0   : > { %p823_p10 = pnand %p828_p9, %p1038_p6 }
 0x2f2   : > { %p824_p11 = pneg %p823_p10 }
 0x2f4   : > { %946 = dma.done.wait (%p824_p11), %s722_s28, 128  }
 0x2f5   : > { %948 = vsyncadd (%p824_p11), %s722_s28, 4294967168  ;;  %p16_p12 = scmp.ge.s32.totalorder %s1021_s22, 4   ;;  %s1206_s17 = smov %s955_s18 }
 0x2f6   : > { %s1207_s18 = smov %s959_s19  ;;  %s1208_s19 = smov %s1032_s25 }
 0x2f7   : > { %s1209_s20 = smov %s1021_s22  ;;  %18 = sbr.rel (!%p16_p12) target bundleno = 6 (0x6), region = 81 }
 0x2fc   :  { %728 = vsyncpa [#allocation4], 1 }
 0x2fd   :  { %730 = vsyncpa [#allocation4 + $0x1], 1 }
 0x2fe   :  { %731 = vsyncpa [#allocation5], 1 }
 0x2ff   :  { %733 = vsyncpa [#allocation5 + $0x1], 1 }

</bundles_post_ra>
